<compile_context>
chip_gen: v5e
topology: v5e:2x2
jax: 0.10.0
libtpu: 0.0.40
codegen_flags: <defaults>
</compile_context>

<pallas_src>
import jax
import jax.numpy as jnp
from jax import lax
from jax.experimental import pallas as pl
from jax.experimental.pallas import tpu as pltpu


def _round_up(x: int, m: int) -> int:
    return ((x + m - 1) // m) * m


def _make_rbm_kernel(k: int, tb: int, nh_p: int, nv_p: int):
    def rbm_kernel(v_ref, w_ref, hb_ref, vb_ref, uh_ref, uv_ref, out_ref):
        W = w_ref[...]  # (nh_p, nv_p) bf16, resident across grid steps

        # Hoist bias broadcasts out of the Gibbs loop (JAX does not CSE them).
        hb = jnp.broadcast_to(hb_ref[...], (tb, nh_p))
        vb = jnp.broadcast_to(vb_ref[...], (tb, nv_p))

        def visible_to_hidden(vv_f32, u):
            # sigmoid(vv @ W.T + h_bias) -> Bernoulli sample.
            # Transposed contraction: no materialised W.T.
            logits = lax.dot_general(
                vv_f32.astype(jnp.bfloat16), W,
                (((1,), (1,)), ((), ())),
                preferred_element_type=jnp.float32) + hb
            p = jax.nn.sigmoid(logits)
            return jnp.where(u < p, 1.0, 0.0)  # exact 0/1 in f32

        def hidden_to_visible(hh_f32, u):
            # sigmoid(hh @ W + v_bias) -> Bernoulli sample.
            logits = lax.dot_general(
                hh_f32.astype(jnp.bfloat16), W,
                (((1,), (0,)), ((), ())),
                preferred_element_type=jnp.float32) + vb
            p = jax.nn.sigmoid(logits)
            return jnp.where(u < p, 1.0, 0.0)

        h = visible_to_hidden(v_ref[...], uh_ref[0])
        # k is small (default 1): statically unroll.
        # TODO(synk): switch to lax.fori_loop(..., unroll=True) if k grows large.
        v_gibb = None
        for step in range(k):
            v_gibb = hidden_to_visible(h, uv_ref[step])
            h = visible_to_hidden(v_gibb, uh_ref[step + 1])

        out_ref[...] = v_gibb

    return rbm_kernel


def rbm_gr_forward(v, W, h_bias, v_bias, key, *, k=1, tb=256):
    """Pallas implementation of RBM_GR.forward. Returns (v, v_gibb)."""
    assert k >= 1, "RBM_GR.forward requires k >= 1 (v_gibb is undefined otherwise)"
    B, n_vis = v.shape
    n_hid = W.shape[0]

    # Lane-dense padding of the feature dims; batch padded to the tile size.
    nv_p = _round_up(n_vis, 128)
    nh_p = _round_up(n_hid, 128)
    TB = min(tb, _round_up(B, 8))
    B_p = _round_up(B, TB)

    v_p = jnp.zeros((B_p, nv_p), jnp.float32).at[:B, :n_vis].set(v)
    W_p = jnp.zeros((nh_p, nv_p), jnp.float32).at[:n_hid, :n_vis].set(W)
    W_p = W_p.astype(jnp.bfloat16)  # halves resident weight VMEM + HBM->VMEM DMA
    hb_p = jnp.zeros((1, nh_p), jnp.float32).at[:, :n_hid].set(h_bias)
    vb_p = jnp.zeros((1, nv_p), jnp.float32).at[:, :n_vis].set(v_bias)

    # 2k+1 uniform draws for the Gibbs chain, generated outside the kernel
    # (portable: the on-chip HW PRNG has no CPU/interpret lowering), one
    # independent slab per batch row so batch tiles are decorrelated.
    k_h, k_vu = jax.random.split(key)
    u_h = jax.random.uniform(k_h, (k + 1, B_p, nh_p), jnp.float32)
    u_v = jax.random.uniform(k_vu, (k, B_p, nv_p), jnp.float32)

    kernel = _make_rbm_kernel(k, TB, nh_p, nv_p)
    out = pl.pallas_call(
        kernel,
        out_shape=jax.ShapeDtypeStruct((B_p, nv_p), jnp.float32),
        grid=(B_p // TB,),
        in_specs=[
            pl.BlockSpec((TB, nv_p), lambda i: (i, 0)),             # v tile
            pl.BlockSpec((nh_p, nv_p), lambda i: (0, 0)),           # W (resident)
            pl.BlockSpec((1, nh_p), lambda i: (0, 0)),              # h_bias (resident)
            pl.BlockSpec((1, nv_p), lambda i: (0, 0)),              # v_bias (resident)
            pl.BlockSpec((k + 1, TB, nh_p), lambda i: (0, i, 0)),   # hidden uniforms
            pl.BlockSpec((k, TB, nv_p), lambda i: (0, i, 0)),       # visible uniforms
        ],
        out_specs=pl.BlockSpec((TB, nv_p), lambda i: (i, 0)),
        compiler_params=pltpu.CompilerParams(
            dimension_semantics=("parallel",)),
    )(v_p, W_p, hb_p, vb_p, u_h, u_v)

    v_gibb = out[:B, :n_vis]
    return v, v_gibb


if __name__ == "__main__":
    # Module hyper-params (defaults from RBM_GR.__init__): n_vis=9, n_hid=3, k=1
    n_vis, n_hid, k = 9, 3, 1
    batch = 8

    key = jax.random.PRNGKey(0)
    k_v, k_hb, k_w, k_x, k_samp = jax.random.split(key, 5)

    # Deterministic parameter init mirroring torch.randn shapes:
    v_bias = jax.random.normal(k_v, (1, n_vis), dtype=jnp.float32)   # self.v
    h_bias = jax.random.normal(k_hb, (1, n_hid), dtype=jnp.float32)  # self.h
    W = jax.random.normal(k_w, (n_hid, n_vis), dtype=jnp.float32)    # self.W

    # Visible input (e.g. normalised feature rows), values in [0, 1)
    x = jax.random.uniform(k_x, (batch, n_vis), dtype=jnp.float32)

    v_out, v_gibb = rbm_gr_forward(x, W, h_bias, v_bias, k_samp, k=k)
    jax.block_until_ready((v_out, v_gibb))

    assert v_out.shape == (batch, n_vis)
    assert v_gibb.shape == (batch, n_vis)
    # v_gibb is a Bernoulli sample -> entries are 0.0 or 1.0
    assert bool(jnp.all((v_gibb == 0.0) | (v_gibb == 1.0)))
    print("KERNEL_OK")
</pallas_src>

<mosaic_0001>
module attributes {stable_mosaic.version = 11 : i64} {
  func.func @rbm_kernel(%arg0: i32, %arg1: memref<8x128xf32, #tpu.memory_space<vmem>>, %arg2: memref<128x128xbf16, #tpu.memory_space<vmem>>, %arg3: memref<1x128xf32, #tpu.memory_space<vmem>>, %arg4: memref<1x128xf32, #tpu.memory_space<vmem>>, %arg5: memref<2x8x128xf32, #tpu.memory_space<vmem>>, %arg6: memref<1x8x128xf32, #tpu.memory_space<vmem>>, %arg7: memref<8x128xf32, #tpu.memory_space<vmem>>) attributes {dimension_semantics = [#tpu.dimension_semantics<parallel>], iteration_bounds = array<i64: 1>, scalar_prefetch = 0 : i64, scratch_operands = 0 : i64, tpu.core_type = #tpu.core_type<tc>, window_params = [{transform_indices = @transform_0, window_bounds = array<i64: 8, 128>}, {pipeline_mode = #tpu.pipeline_mode<synchronous>, transform_indices = @transform_1, window_bounds = array<i64: 128, 128>}, {pipeline_mode = #tpu.pipeline_mode<synchronous>, transform_indices = @transform_2, window_bounds = array<i64: 1, 128>}, {pipeline_mode = #tpu.pipeline_mode<synchronous>, transform_indices = @transform_3, window_bounds = array<i64: 1, 128>}, {transform_indices = @transform_4, window_bounds = array<i64: 2, 8, 128>}, {transform_indices = @transform_5, window_bounds = array<i64: 1, 8, 128>}, {transform_indices = @transform_6, window_bounds = array<i64: 8, 128>}]} {
    %c0 = arith.constant 0 : index
    %c0_0 = arith.constant 0 : index
    %0 = vector.load %arg2[%c0, %c0_0] : memref<128x128xbf16, #tpu.memory_space<vmem>>, vector<128x128xbf16>
    %c0_1 = arith.constant 0 : index
    %c0_2 = arith.constant 0 : index
    %1 = vector.load %arg3[%c0_1, %c0_2] : memref<1x128xf32, #tpu.memory_space<vmem>>, vector<1x128xf32>
    %2 = vector.shape_cast %1 : vector<1x128xf32> to vector<1x128xf32>
    %3 = vector.broadcast %2 : vector<1x128xf32> to vector<8x128xf32>
    %c0_3 = arith.constant 0 : index
    %c0_4 = arith.constant 0 : index
    %4 = vector.load %arg4[%c0_3, %c0_4] : memref<1x128xf32, #tpu.memory_space<vmem>>, vector<1x128xf32>
    %5 = vector.shape_cast %4 : vector<1x128xf32> to vector<1x128xf32>
    %6 = vector.broadcast %5 : vector<1x128xf32> to vector<8x128xf32>
    %c0_5 = arith.constant 0 : index
    %c0_6 = arith.constant 0 : index
    %7 = vector.load %arg1[%c0_5, %c0_6] : memref<8x128xf32, #tpu.memory_space<vmem>>, vector<8x128xf32>
    %c0_7 = arith.constant 0 : index
    %c0_8 = arith.constant 0 : index
    %c0_9 = arith.constant 0 : index
    %8 = vector.load %arg5[%c0_7, %c0_8, %c0_9] : memref<2x8x128xf32, #tpu.memory_space<vmem>>, vector<1x8x128xf32>
    %9 = vector.shape_cast %8 : vector<1x8x128xf32> to vector<8x128xf32>
    %10 = arith.truncf %7 : vector<8x128xf32> to vector<8x128xbf16>
    %cst = arith.constant dense<0.000000e+00> : vector<8x128xf32>
    %11 = tpu.matmul %10, %0, %cst {dimension_numbers = #tpu.dot_dimension_numbers<[1], [1], [0], [0], [0, 0, 1, 0], [], []>} : vector<8x128xbf16>, vector<128x128xbf16>, vector<8x128xf32> -> vector<8x128xf32>
    %12 = arith.addf %11, %3 : vector<8x128xf32>
    %13 = arith.negf %12 : vector<8x128xf32>
    %14 = math.exp %13 : vector<8x128xf32>
    %cst_10 = arith.constant 1.000000e+00 : f32
    %15 = vector.broadcast %cst_10 : f32 to vector<8x128xf32>
    %16 = arith.addf %15, %14 : vector<8x128xf32>
    %17 = arith.divf %15, %16 : vector<8x128xf32>
    %18 = arith.cmpf olt, %9, %17 : vector<8x128xf32>
    %cst_11 = arith.constant 1.000000e+00 : f32
    %cst_12 = arith.constant 0.000000e+00 : f32
    %19 = vector.broadcast %cst_11 : f32 to vector<8x128xf32>
    %20 = vector.broadcast %cst_12 : f32 to vector<8x128xf32>
    %21 = arith.select %18, %19, %20 : vector<8x128xi1>, vector<8x128xf32>
    %c0_13 = arith.constant 0 : index
    %c0_14 = arith.constant 0 : index
    %c0_15 = arith.constant 0 : index
    %22 = vector.load %arg6[%c0_13, %c0_14, %c0_15] : memref<1x8x128xf32, #tpu.memory_space<vmem>>, vector<1x8x128xf32>
    %23 = vector.shape_cast %22 : vector<1x8x128xf32> to vector<8x128xf32>
    %24 = arith.truncf %21 : vector<8x128xf32> to vector<8x128xbf16>
    %cst_16 = arith.constant dense<0.000000e+00> : vector<8x128xf32>
    %25 = tpu.matmul %24, %0, %cst_16 {dimension_numbers = #tpu.dot_dimension_numbers<[1], [0], [0], [1], [0, 0, 1, 1], [], []>} : vector<8x128xbf16>, vector<128x128xbf16>, vector<8x128xf32> -> vector<8x128xf32>
    %26 = arith.addf %25, %6 : vector<8x128xf32>
    %27 = arith.negf %26 : vector<8x128xf32>
    %28 = math.exp %27 : vector<8x128xf32>
    %cst_17 = arith.constant 1.000000e+00 : f32
    %29 = vector.broadcast %cst_17 : f32 to vector<8x128xf32>
    %30 = arith.addf %29, %28 : vector<8x128xf32>
    %31 = arith.divf %29, %30 : vector<8x128xf32>
    %32 = arith.cmpf olt, %23, %31 : vector<8x128xf32>
    %cst_18 = arith.constant 1.000000e+00 : f32
    %cst_19 = arith.constant 0.000000e+00 : f32
    %33 = vector.broadcast %cst_18 : f32 to vector<8x128xf32>
    %34 = vector.broadcast %cst_19 : f32 to vector<8x128xf32>
    %35 = arith.select %32, %33, %34 : vector<8x128xi1>, vector<8x128xf32>
    %c0_20 = arith.constant 0 : index
    %c0_21 = arith.constant 0 : index
    %36 = vector.load %arg7[%c0_20, %c0_21] : memref<8x128xf32, #tpu.memory_space<vmem>>, vector<8x128xf32>
    tpu.vector_store %arg7[%c0_20, %c0_21], %35 {strides = array<i32>} : memref<8x128xf32, #tpu.memory_space<vmem>>, vector<8x128xf32>,
    return
  }
  func.func @transform_0(%arg0: i32) -> (i32, i32) {
    %c0_i32 = arith.constant 0 : i32
    %c0_i32_0 = arith.constant 0 : i32
    return %arg0, %c0_i32 : i32, i32
  }
  func.func @transform_1(%arg0: i32) -> (i32, i32) {
    %c0_i32 = arith.constant 0 : i32
    %c0_i32_0 = arith.constant 0 : i32
    %c0_i32_1 = arith.constant 0 : i32
    return %c0_i32, %c0_i32_0 : i32, i32
  }
  func.func @transform_2(%arg0: i32) -> (i32, i32) {
    %c0_i32 = arith.constant 0 : i32
    %c0_i32_0 = arith.constant 0 : i32
    %c0_i32_1 = arith.constant 0 : i32
    return %c0_i32, %c0_i32_0 : i32, i32
  }
  func.func @transform_3(%arg0: i32) -> (i32, i32) {
    %c0_i32 = arith.constant 0 : i32
    %c0_i32_0 = arith.constant 0 : i32
    %c0_i32_1 = arith.constant 0 : i32
    return %c0_i32, %c0_i32_0 : i32, i32
  }
  func.func @transform_4(%arg0: i32) -> (i32, i32, i32) {
    %c0_i32 = arith.constant 0 : i32
    %c0_i32_0 = arith.constant 0 : i32
    %c0_i32_1 = arith.constant 0 : i32
    return %c0_i32, %arg0, %c0_i32_0 : i32, i32, i32
  }
  func.func @transform_5(%arg0: i32) -> (i32, i32, i32) {
    %c0_i32 = arith.constant 0 : i32
    %c0_i32_0 = arith.constant 0 : i32
    %c0_i32_1 = arith.constant 0 : i32
    return %c0_i32, %arg0, %c0_i32_0 : i32, i32, i32
  }
  func.func @transform_6(%arg0: i32) -> (i32, i32) {
    %c0_i32 = arith.constant 0 : i32
    %c0_i32_0 = arith.constant 0 : i32
    return %arg0, %c0_i32 : i32, i32
  }
}

</mosaic_0001>

<bundles_post_ra>
// kernel: tpu_custom_call.1
= control target key start
LH: loop header
LB: loop body
LE: loop exit
PB: predicated region body
PF: predicated region fallthrough
CT: control target
= control target key end

     0   :  { %11 = vsyncpa [#allocation3], 0  ;;  %s508_s0 = inlined_call_operand.hbm [shape: f32[8,128], index: 0, kind: input, shape index: {}]   ;;  %s509_s1 = inlined_call_operand.hbm [shape: bf16[128,128], index: 1, kind: input, shape index: {}]   ;;  %s510_s2 = inlined_call_operand.vmem [shape: f32[1,128], index: 2, kind: input, shape index: {}]   ;;  %s511_s3 = inlined_call_operand.vmem [shape: f32[1,128], index: 3, kind: input, shape index: {}]   ;;  %s512_s4 = inlined_call_operand.hbm [shape: f32[2,8,128], index: 4, kind: input, shape index: {}]   ;;  %s513_s5 = inlined_call_operand.hbm [shape: f32[1,8,128], index: 5, kind: input, shape index: {}]   ;;  %s514_s6 = inlined_call_operand.hbm [shape: f32[8,128], index: 6, kind: output, shape index: {}]  }
   0x1   :  { %12 = vsyncpa [#allocation6], 0 }
   0x2   :  { %13 = vsyncpa [#allocation9], 0  ;;  %s30_s23 = sshll.u32 %s509_s1, 4  ;;  %s31_s23 = int_to_ptr.hbm [resolvable:$true] %s30_s23 }
   0x3   :  { %14 = vsyncpa [#allocation4], 0  ;;  %s441_s24 = smov [#allocation5]   ;;  %s20_s28 = sshll.u32 %s508_s0, 4  ;;  %s21_s28 = int_to_ptr.hbm [resolvable:$true] %s20_s28 }
   0x4   :  { %s32_s25 = sshll.u32 %s441_s24, 4  ;;  %s442_s29 = smov 64   ;;  %s33_s25 = int_to_ptr.vmem [resolvable:$true] %s32_s25 }
   0x5   :  { %s443_s30 = smov 4   ;;  %s444_s7 = smov [#allocation2]  }
   0x6   :  { %38 = dma.hbm_to_vmem [thread:$0]  %s31_s23, 1024, %s33_s25, [#allocation6], %s442_s29, %s442_s29, %s443_s30  }
   0x7   :  { %s22_s8 = sshll.u32 %s444_s7, 4  ;;  %s47_s11 = sshll.u32 %s512_s4, 4  ;;  %s23_s8 = int_to_ptr.vmem [resolvable:$true] %s22_s8  ;;  %s48_s11 = int_to_ptr.hbm [resolvable:$true] %s47_s11 }
   0x8   :  { %25 = dma.hbm_to_vmem [thread:$0]  %s21_s28, 128, %s23_s8, [#allocation3]  }
   0x9   :  { %s445_s1 = smov [#allocation7]   ;;  %s61_s0 = sshll.u32 %s513_s5, 4  ;;  %s62_s0 = int_to_ptr.hbm [resolvable:$true] %s61_s0 }
   0xa   :  { %s49_s12 = sshll.u32 %s445_s1, 4  ;;  %s446_s15 = smov 128   ;;  %s50_s12 = int_to_ptr.vmem [resolvable:$true] %s49_s12 }
   0xb   :  { %s447_s16 = smov 8   ;;  %s448_s17 = smov [#allocation8]  }
   0xc   :  { %55 = dma.hbm_to_vmem [thread:$0]  %s48_s11, 256, %s50_s12, [#allocation6], %s446_s15, %s446_s15, %s447_s16  }
   0xd   :  { %s63_s18 = sshll.u32 %s448_s17, 4  ;;  %s64_s18 = int_to_ptr.vmem [resolvable:$true] %s63_s18 }
   0xe   :  { %66 = dma.hbm_to_vmem [thread:$0]  %s62_s0, 128, %s64_s18, [#allocation9]  }
   0xf   :  { %433 = dma.done.wait [#allocation3], 128  }
  0x10   :  { %434 = vsyncadd [#allocation3], 4294967168 }
  0x11   :  { %435 = dma.done.wait [#allocation6], 1280  }
  0x12   :  { %436 = vsyncadd [#allocation6], 4294966016 }
  0x13   :  { %437 = dma.done.wait [#allocation9], 128  }
  0x14   :  { %438 = vsyncadd [#allocation9], 4294967168  ;;  %v291_v0 = vld [vmem:[#allocation5 + $0x38] sm:$0xff]  ;;  %v290_v1 = vld [vmem:[#allocation5 + $0x30] sm:$0xff]  ;;  %v449_v28 = vmov 1.0|1.0  }
  0x15   :  { %158 = vmatpush.bf16.xpose.msra.mxu0 %v291_v0  ;;  %194 = vmatpush.bf16.msra.mxu1 %v291_v0  ;;  %v289_v2 = vld [vmem:[#allocation5 + $0x28] sm:$0xff]  ;;  %v288_v3 = vld [vmem:[#allocation5 + $0x20] sm:$0xff]  ;;  %v287_v4 = vld [vmem:[#allocation5 + $0x18] sm:$0xff]  ;;  %s236_s23 = sshll.u32 %s514_s6, 4  ;;  %v451_v47 = vmov 0.0   ;;  %s237_s23 = int_to_ptr.hbm [resolvable:$true] %s236_s23 }
  0x16   :  { %v286_v5 = vld [vmem:[#allocation5 + $0x10] sm:$0xff]  ;;  %v285_v6 = vld [vmem:[#allocation5 + $0x8] sm:$0xff]  ;;  %v284_v7 = vld [vmem:[#allocation5] sm:$0xff] }
  0x17   :  { %v107_v8 = vld [vmem:[#allocation2] sm:$0xff]  ;;  %v108_v24 = vld [vmem:[#allocation7] sm:$0xff]  ;;  %v192_v43 = vld [vmem:[#allocation8] sm:$0xff] }
  0x18   :  { %v109_v9 = vpack.c.bf16 %v107_v8, %v107_v8  ;;  %v303_v10 = vld [vmem:[%s510_s2] ss:$0 sm:$0xff] }
  0x19   :  { %195 = vmatpush.bf16.msra.mxu1 %v290_v1  ;;  %v304_v29 = vld [vmem:[%s511_s3] ss:$0 sm:$0xff]  ;;  %s450_s3 = smov [#allocation10]  }
  0x1a   :  { %s234_s20 = sshll.u32 %s450_s3, 4  ;;  %s235_s20 = int_to_ptr.vmem [resolvable:$true] %s234_s20 }
  0x1d   :  { %159 = vmatpush.bf16.xpose.msra.mxu0 %v290_v1  ;;  %196 = vmatpush.bf16.msra.mxu1 %v289_v2 }
  0x21   :  { %197 = vmatpush.bf16.msra.mxu1 %v288_v3 }
  0x25   :  { %160 = vmatpush.bf16.xpose.msra.mxu0 %v289_v2  ;;  %198 = vmatpush.bf16.msra.mxu1 %v287_v4 }
  0x29   :  { %199 = vmatpush.bf16.msra.mxu1 %v286_v5 }
  0x2d   :  { %161 = vmatpush.bf16.xpose.msra.mxu0 %v288_v3  ;;  %200 = vmatpush.bf16.msra.mxu1 %v285_v6 }
  0x31   :  { %201 = vmatpush.bf16.msra.mxu1 %v284_v7 }
  0x35   :  { %162 = vmatpush.bf16.xpose.msra.mxu0 %v287_v4 }
  0x3d   :  { %163 = vmatpush.bf16.xpose.msra.mxu0 %v286_v5 }
  0x45   :  { %164 = vmatpush.bf16.xpose.msra.mxu0 %v285_v6 }
  0x4d   :  { %165 = vmatpush.bf16.xpose.msra.mxu0 %v284_v7 }
  0x54   :  { %166 = vmatmul.bf16.vlgmr.msra.gmra.mxu0 %v109_v9 }
  0xd1   :  { %v167_v11 = vpop.f32.mrf.mxu0 }
  0xd2   :  { %v168_v12 = vadd.f32 %v303_v10, %v167_v11 }
  0xd4   :  { %v280_v13 = vmul.f32 -1.442695, %v168_v12 }
  0xd6   :  { %305 = vpow2.f32 %v280_v13 }
  0xd9   :  { %v169_v14 = vpop.f32.mrf.mxu0 }
  0xdc   :  { %v306_v15 = vpop.eup %305 }
  0xdd   :  { %v174_v16 = vadd.f32 1.0, %v306_v15 }
  0xdf   :  { %307 = vrcp.f32 %v174_v16  ;;  %v186_v20 = vand.u32 2147483648, %v174_v16  ;;  %v184_v22 = vand.u32 2147483647, %v174_v16  ;;  %vm180_vm1 = vweird.f32 %v174_v16 }
  0xe1   :  { %v187_v25 = vor.u32 1.1754944e-38, %v186_v20  ;;  %vm185_vm3 = vcmp.eq.f32.partialorder %v184_v22, 8.507059e+37 }
  0xe5   :  { %v308_v17 = vpop.eup %307 }
  0xe6   :  { %v176_v18 = vmul.f32 %v308_v17, %v174_v16  ;;  %vm181_vm0 = vweird.f32 %v308_v17 }
  0xe7   :  { %vm182_vm2 = vmor %vm180_vm1, %vm181_vm0 }
  0xe8   :  { %v177_v19 = vsub.f32 1.0, %v176_v18 }
  0xea   :  { %v178_v21 = vmul.f32 %v308_v17, %v177_v19 }
  0xec   :  { %v179_v23 = vadd.f32 %v308_v17, %v178_v21 }
  0xee   :  { %v183_v26 = vsel %vm182_vm2, %v308_v17, %v179_v23 }
  0xef   :  { %v188_v27 = vsel %vm185_vm3, %v187_v25, %v183_v26 }
  0xf0   :  { %vm190_vm4 = vcmp.lt.f32.partialorder %v108_v24, %v188_v27 }
  0xf1   :  { %vm281_vm5 = vmpackc.low %vm190_vm4, %vm190_vm4 }
  0xf2   :  { %282 = vmatmul.msk.bf16.vlgmr.msra.gmra.mxu1 %vm281_vm5, %v449_v28 }
 0x16f   :  { %v203_v30 = vpop.f32.mrf.mxu1 }
 0x170   :  { %v204_v31 = vadd.f32 %v304_v29, %v203_v30 }
 0x172   :  { %v283_v32 = vmul.f32 -1.442695, %v204_v31 }
 0x174   :  { %309 = vpow2.f32 %v283_v32 }
 0x177   :  { %v205_v33 = vpop.f32.mrf.mxu1 }
 0x17a   :  { %v310_v34 = vpop.eup %309 }
 0x17b   :  { %v210_v35 = vadd.f32 1.0, %v310_v34 }
 0x17d   :  { %311 = vrcp.f32 %v210_v35  ;;  %v222_v39 = vand.u32 2147483648, %v210_v35  ;;  %v220_v41 = vand.u32 2147483647, %v210_v35  ;;  %vm216_vm7 = vweird.f32 %v210_v35 }
 0x17f   :  { %v223_v44 = vor.u32 1.1754944e-38, %v222_v39  ;;  %vm221_vm9 = vcmp.eq.f32.partialorder %v220_v41, 8.507059e+37 }
 0x183   :  { %v312_v36 = vpop.eup %311 }
 0x184   :  { %v212_v37 = vmul.f32 %v312_v36, %v210_v35  ;;  %vm217_vm6 = vweird.f32 %v312_v36 }
 0x185   :  { %vm218_vm8 = vmor %vm216_vm7, %vm217_vm6 }
 0x186   :  { %v213_v38 = vsub.f32 1.0, %v212_v37 }
 0x188   :  { %v214_v40 = vmul.f32 %v312_v36, %v213_v38 }
 0x18a   :  { %v215_v42 = vadd.f32 %v312_v36, %v214_v40 }
 0x18c   :  { %v219_v45 = vsel %vm218_vm8, %v312_v36, %v215_v42 }
 0x18d   :  { %v224_v46 = vsel %vm221_vm9, %v223_v44, %v219_v45 }
 0x18e   :  { %vm226_vm10 = vcmp.lt.f32.partialorder %v192_v43, %v224_v46 }
 0x18f   :  { %v227_v48 = vsel %vm226_vm10, 1.0, %v451_v47 }
 0x190   :  { %228 = vst [vmem:[#allocation10] sm:$0xff] %v227_v48 }
 0x191   :  { %239 = dma.vmem_to_hbm [thread:$0]  %s235_s20, 128, %s237_s23, [#allocation4]  }
 0x192   :  { %439 = dma.done.wait [#allocation4], 128  }
 0x193   :  { %440 = vsyncadd [#allocation4], 4294967168 }
 0x194   :  { %244 = vsyncpa [#allocation3], 1 }
 0x195   :  { %245 = vsyncpa [#allocation6], 1 }
 0x196   :  { %246 = vsyncpa [#allocation9], 1 }
 0x197   :  { %247 = vsyncpa [#allocation4], 1 }

</bundles_post_ra>
